<compile_context>
chip_gen: v6e
topology: v6e:2x2x1
jax: 0.10.0
libtpu: 0.0.40
codegen_flags: <defaults>
</compile_context>

<pallas_src>
import jax
import jax.numpy as jnp
from jax.experimental import pallas as pl
from jax.experimental.pallas import tpu as pltpu


# ----------------------------------------------------------------------------- kernel
def plain_decoder_kernel(x_ref, z_ref,
                         w1x_ref, w1z_ref, b1_ref,
                         w2_ref, b2_ref,
                         w3_ref, b3_ref,
                         w4_ref, b4_ref,
                         out_ref):
    # cat(x, z_repeated) @ W1^T + b1  ==  x @ W1x  +  (z @ W1z + b1)   (row-broadcast)
    zh = jnp.dot(z_ref[...], w1z_ref[...],
                 preferred_element_type=jnp.float32) + b1_ref[...]        # (1, h1)
    h1 = jnp.dot(x_ref[...], w1x_ref[...],
                 preferred_element_type=jnp.float32) + zh                 # (bt, h1)

    # TODO(synk): training-mode dropout (pltpu.prng_seed + pltpu.stateful_bernoulli);
    # eval-mode dropout is the identity, which commutes with the ReLUs below.
    h1 = jnp.maximum(h1, 0.0)

    h2 = jnp.maximum(
        jnp.dot(h1, w2_ref[...], preferred_element_type=jnp.float32) + b2_ref[...],
        0.0)
    h3 = jnp.maximum(
        jnp.dot(h2, w3_ref[...], preferred_element_type=jnp.float32) + b3_ref[...],
        0.0)

    out_ref[...] = (
        jnp.dot(h3, w4_ref[...], preferred_element_type=jnp.float32) + b4_ref[...]
    ).astype(out_ref.dtype)


# ------------------------------------------------------------------- param preparation
def prepare_params(torch_params, x_dim):
    """Hoisted out of the forward path: transpose PyTorch (out,in) Linear weights to
    (in,out) once, split W1 into its x / z column blocks, reshape biases to (1,out)."""
    w1 = jnp.asarray(torch_params["w1"], jnp.float32)          # (h1, x_dim + z_dim)
    return {
        "w1x": jnp.asarray(w1[:, :x_dim].T),                   # (x_dim, h1)
        "w1z": jnp.asarray(w1[:, x_dim:].T),                   # (z_dim, h1)
        "b1": jnp.asarray(torch_params["b1"], jnp.float32).reshape(1, -1),
        "w2": jnp.asarray(torch_params["w2"], jnp.float32).T,  # (h1, h2)
        "b2": jnp.asarray(torch_params["b2"], jnp.float32).reshape(1, -1),
        "w3": jnp.asarray(torch_params["w3"], jnp.float32).T,  # (h2, h3)
        "b3": jnp.asarray(torch_params["b3"], jnp.float32).reshape(1, -1),
        "w4": jnp.asarray(torch_params["w4"], jnp.float32).T,  # (h3, y_dim)
        "b4": jnp.asarray(torch_params["b4"], jnp.float32).reshape(1, -1),
    }


# ---------------------------------------------------------------------------- forward
def plain_decoder_forward(x, z, task, prepared, *, batch_tile=256):
    del task  # unused in Plain_Decoder, kept to match the PyTorch signature
    B, x_dim = x.shape
    y_dim = prepared["w4"].shape[1]
    z2 = jnp.asarray(z, jnp.float32).reshape(1, -1)

    # Batch tile: multiple of 8 sublanes (f32), pad the batch if necessary.
    bt = max(8, (min(batch_tile, max(B, 8)) // 8) * 8)
    Bp = ((B + bt - 1) // bt) * bt
    xp = jnp.asarray(x, jnp.float32)
    if Bp != B:
        xp = jnp.pad(xp, ((0, Bp - B), (0, 0)))

    def resident(shape):  # weights/bias: same block every grid step -> stay in VMEM
        return pl.BlockSpec(shape, lambda i: (0, 0))

    out = pl.pallas_call(
        plain_decoder_kernel,
        out_shape=jax.ShapeDtypeStruct((Bp, y_dim), jnp.float32),
        grid_spec=pltpu.PrefetchScalarGridSpec(
            num_scalar_prefetch=0,
            grid=(Bp // bt,),
            in_specs=[
                pl.BlockSpec((bt, x_dim), lambda i: (i, 0)),   # x: batch-tiled / pipelined
                resident(z2.shape),
                resident(prepared["w1x"].shape),
                resident(prepared["w1z"].shape),
                resident(prepared["b1"].shape),
                resident(prepared["w2"].shape),
                resident(prepared["b2"].shape),
                resident(prepared["w3"].shape),
                resident(prepared["b3"].shape),
                resident(prepared["w4"].shape),
                resident(prepared["b4"].shape),
            ],
            out_specs=pl.BlockSpec((bt, y_dim), lambda i: (i, 0)),
        ),
        compiler_params=pltpu.CompilerParams(
            dimension_semantics=("parallel",)),
    )(xp, z2,
      prepared["w1x"], prepared["w1z"], prepared["b1"],
      prepared["w2"], prepared["b2"],
      prepared["w3"], prepared["b3"],
      prepared["w4"], prepared["b4"])
    return out[:B]


# ------------------------------------------------------------------------------- main
if __name__ == "__main__":
    # Small synthetic config matching the module's constructor
    x_dim, z_dim, task_dim = 32, 32, 16
    h1_dim, h2_dim, h3_dim, y_dim = 64, 64, 32, 1
    B = 16  # interaction_size

    key = jax.random.PRNGKey(0)
    ks = jax.random.split(key, 12)

    # PyTorch-layout parameters (Linear weight: (out, in), bias: (out,))
    torch_params = {
        "w1": jax.random.normal(ks[0], (h1_dim, x_dim + z_dim), jnp.float32) * 0.1,
        "b1": jax.random.normal(ks[1], (h1_dim,), jnp.float32) * 0.1,
        "w2": jax.random.normal(ks[2], (h2_dim, h1_dim), jnp.float32) * 0.1,
        "b2": jax.random.normal(ks[3], (h2_dim,), jnp.float32) * 0.1,
        "w3": jax.random.normal(ks[4], (h3_dim, h2_dim), jnp.float32) * 0.1,
        "b3": jax.random.normal(ks[5], (h3_dim,), jnp.float32) * 0.1,
        "w4": jax.random.normal(ks[6], (y_dim, h3_dim), jnp.float32) * 0.1,
        "b4": jax.random.normal(ks[7], (y_dim,), jnp.float32) * 0.1,
    }
    prepared = prepare_params(torch_params, x_dim)  # hoisted: done once, not per call

    x = jax.random.normal(ks[8], (B, x_dim), jnp.float32)
    z = jax.random.normal(ks[9], (z_dim,), jnp.float32)
    task = jax.random.normal(ks[10], (task_dim,), jnp.float32)  # ignored, matches signature

    y_pred = plain_decoder_forward(x, z, task, prepared)
    jax.block_until_ready(y_pred)

    # Plain-JAX reference (same math as the PyTorch forward in eval mode)
    inputs = jnp.concatenate([x, jnp.tile(z.reshape(1, -1), (B, 1))], axis=1)
    r1 = jnp.maximum(inputs @ torch_params["w1"].T + torch_params["b1"], 0.0)
    r2 = jnp.maximum(r1 @ torch_params["w2"].T + torch_params["b2"], 0.0)
    r3 = jnp.maximum(r2 @ torch_params["w3"].T + torch_params["b3"], 0.0)
    ref = r3 @ torch_params["w4"].T + torch_params["b4"]

    assert y_pred.shape == (B, y_dim)
    assert jnp.allclose(y_pred, ref, atol=1e-4, rtol=1e-5), "mismatch vs reference"

    print("KERNEL_OK")
</pallas_src>

<mosaic_0001>
module attributes {stable_mosaic.version = 11 : i64} {
  func.func @plain_decoder_kernel(%arg0: i32, %arg1: memref<16x32xf32, #tpu.memory_space<vmem>>, %arg2: memref<1x32xf32, #tpu.memory_space<vmem>>, %arg3: memref<32x64xf32, #tpu.memory_space<vmem>>, %arg4: memref<32x64xf32, #tpu.memory_space<vmem>>, %arg5: memref<1x64xf32, #tpu.memory_space<vmem>>, %arg6: memref<64x64xf32, #tpu.memory_space<vmem>>, %arg7: memref<1x64xf32, #tpu.memory_space<vmem>>, %arg8: memref<64x32xf32, #tpu.memory_space<vmem>>, %arg9: memref<1x32xf32, #tpu.memory_space<vmem>>, %arg10: memref<32x1xf32, #tpu.memory_space<vmem>>, %arg11: memref<1x1xf32, #tpu.memory_space<vmem>>, %arg12: memref<16x1xf32, #tpu.memory_space<vmem>>) attributes {dimension_semantics = [#tpu.dimension_semantics<parallel>], iteration_bounds = array<i64: 1>, scalar_prefetch = 0 : i64, scratch_operands = 0 : i64, tpu.core_type = #tpu.core_type<tc>, window_params = [{transform_indices = @transform_0, window_bounds = array<i64: 16, 32>}, {pipeline_mode = #tpu.pipeline_mode<synchronous>, transform_indices = @transform_1, window_bounds = array<i64: 1, 32>}, {pipeline_mode = #tpu.pipeline_mode<synchronous>, transform_indices = @transform_2, window_bounds = array<i64: 32, 64>}, {pipeline_mode = #tpu.pipeline_mode<synchronous>, transform_indices = @transform_3, window_bounds = array<i64: 32, 64>}, {pipeline_mode = #tpu.pipeline_mode<synchronous>, transform_indices = @transform_4, window_bounds = array<i64: 1, 64>}, {pipeline_mode = #tpu.pipeline_mode<synchronous>, transform_indices = @transform_5, window_bounds = array<i64: 64, 64>}, {pipeline_mode = #tpu.pipeline_mode<synchronous>, transform_indices = @transform_6, window_bounds = array<i64: 1, 64>}, {pipeline_mode = #tpu.pipeline_mode<synchronous>, transform_indices = @transform_7, window_bounds = array<i64: 64, 32>}, {pipeline_mode = #tpu.pipeline_mode<synchronous>, transform_indices = @transform_8, window_bounds = array<i64: 1, 32>}, {pipeline_mode = #tpu.pipeline_mode<synchronous>, transform_indices = @transform_9, window_bounds = array<i64: 32, 1>}, {pipeline_mode = #tpu.pipeline_mode<synchronous>, transform_indices = @transform_10, window_bounds = array<i64: 1, 1>}, {transform_indices = @transform_11, window_bounds = array<i64: 16, 1>}]} {
    %c0 = arith.constant 0 : index
    %c0_0 = arith.constant 0 : index
    %0 = vector.load %arg2[%c0, %c0_0] : memref<1x32xf32, #tpu.memory_space<vmem>>, vector<1x32xf32>
    %c0_1 = arith.constant 0 : index
    %c0_2 = arith.constant 0 : index
    %1 = vector.load %arg4[%c0_1, %c0_2] : memref<32x64xf32, #tpu.memory_space<vmem>>, vector<32x64xf32>
    %cst = arith.constant dense<0.000000e+00> : vector<1x64xf32>
    %2 = tpu.matmul %0, %1, %cst {dimension_numbers = #tpu.dot_dimension_numbers<[1], [0], [0], [1], [0, 0, 1, 1], [], []>} : vector<1x32xf32>, vector<32x64xf32>, vector<1x64xf32> -> vector<1x64xf32>
    %c0_3 = arith.constant 0 : index
    %c0_4 = arith.constant 0 : index
    %3 = vector.load %arg5[%c0_3, %c0_4] : memref<1x64xf32, #tpu.memory_space<vmem>>, vector<1x64xf32>
    %4 = arith.addf %2, %3 : vector<1x64xf32>
    %c0_5 = arith.constant 0 : index
    %c0_6 = arith.constant 0 : index
    %5 = vector.load %arg1[%c0_5, %c0_6] : memref<16x32xf32, #tpu.memory_space<vmem>>, vector<16x32xf32>
    %c0_7 = arith.constant 0 : index
    %c0_8 = arith.constant 0 : index
    %6 = vector.load %arg3[%c0_7, %c0_8] : memref<32x64xf32, #tpu.memory_space<vmem>>, vector<32x64xf32>
    %cst_9 = arith.constant dense<0.000000e+00> : vector<16x64xf32>
    %7 = tpu.matmul %5, %6, %cst_9 {dimension_numbers = #tpu.dot_dimension_numbers<[1], [0], [0], [1], [0, 0, 1, 1], [], []>} : vector<16x32xf32>, vector<32x64xf32>, vector<16x64xf32> -> vector<16x64xf32>
    %8 = vector.broadcast %4 : vector<1x64xf32> to vector<16x64xf32>
    %9 = arith.addf %7, %8 : vector<16x64xf32>
    %cst_10 = arith.constant 0.000000e+00 : f32
    %10 = vector.broadcast %cst_10 : f32 to vector<16x64xf32>
    %11 = arith.maximumf %9, %10 : vector<16x64xf32>
    %c0_11 = arith.constant 0 : index
    %c0_12 = arith.constant 0 : index
    %12 = vector.load %arg6[%c0_11, %c0_12] : memref<64x64xf32, #tpu.memory_space<vmem>>, vector<64x64xf32>
    %cst_13 = arith.constant dense<0.000000e+00> : vector<16x64xf32>
    %13 = tpu.matmul %11, %12, %cst_13 {dimension_numbers = #tpu.dot_dimension_numbers<[1], [0], [0], [1], [0, 0, 1, 1], [], []>} : vector<16x64xf32>, vector<64x64xf32>, vector<16x64xf32> -> vector<16x64xf32>
    %c0_14 = arith.constant 0 : index
    %c0_15 = arith.constant 0 : index
    %14 = vector.load %arg7[%c0_14, %c0_15] : memref<1x64xf32, #tpu.memory_space<vmem>>, vector<1x64xf32>
    %15 = vector.broadcast %14 : vector<1x64xf32> to vector<16x64xf32>
    %16 = arith.addf %13, %15 : vector<16x64xf32>
    %cst_16 = arith.constant 0.000000e+00 : f32
    %17 = vector.broadcast %cst_16 : f32 to vector<16x64xf32>
    %18 = arith.maximumf %16, %17 : vector<16x64xf32>
    %c0_17 = arith.constant 0 : index
    %c0_18 = arith.constant 0 : index
    %19 = vector.load %arg8[%c0_17, %c0_18] : memref<64x32xf32, #tpu.memory_space<vmem>>, vector<64x32xf32>
    %cst_19 = arith.constant dense<0.000000e+00> : vector<16x32xf32>
    %20 = tpu.matmul %18, %19, %cst_19 {dimension_numbers = #tpu.dot_dimension_numbers<[1], [0], [0], [1], [0, 0, 1, 1], [], []>} : vector<16x64xf32>, vector<64x32xf32>, vector<16x32xf32> -> vector<16x32xf32>
    %c0_20 = arith.constant 0 : index
    %c0_21 = arith.constant 0 : index
    %21 = vector.load %arg9[%c0_20, %c0_21] : memref<1x32xf32, #tpu.memory_space<vmem>>, vector<1x32xf32>
    %22 = vector.broadcast %21 : vector<1x32xf32> to vector<16x32xf32>
    %23 = arith.addf %20, %22 : vector<16x32xf32>
    %cst_22 = arith.constant 0.000000e+00 : f32
    %24 = vector.broadcast %cst_22 : f32 to vector<16x32xf32>
    %25 = arith.maximumf %23, %24 : vector<16x32xf32>
    %c0_23 = arith.constant 0 : index
    %c0_24 = arith.constant 0 : index
    %26 = vector.load %arg10[%c0_23, %c0_24] : memref<32x1xf32, #tpu.memory_space<vmem>>, vector<32x1xf32>
    %cst_25 = arith.constant dense<0.000000e+00> : vector<16x1xf32>
    %27 = tpu.matmul %25, %26, %cst_25 {dimension_numbers = #tpu.dot_dimension_numbers<[1], [0], [0], [1], [0, 0, 1, 1], [], []>} : vector<16x32xf32>, vector<32x1xf32>, vector<16x1xf32> -> vector<16x1xf32>
    %c0_26 = arith.constant 0 : index
    %c0_27 = arith.constant 0 : index
    %28 = vector.load %arg11[%c0_26, %c0_27] : memref<1x1xf32, #tpu.memory_space<vmem>>, vector<1x1xf32>
    %29 = vector.broadcast %28 : vector<1x1xf32> to vector<16x1xf32>
    %30 = arith.addf %27, %29 : vector<16x1xf32>
    %c0_28 = arith.constant 0 : index
    %c0_29 = arith.constant 0 : index
    %31 = vector.load %arg12[%c0_28, %c0_29] : memref<16x1xf32, #tpu.memory_space<vmem>>, vector<16x1xf32>
    tpu.vector_store %arg12[%c0_28, %c0_29], %30 {strides = array<i32>} : memref<16x1xf32, #tpu.memory_space<vmem>>, vector<16x1xf32>,
    return
  }
  func.func @transform_0(%arg0: i32) -> (i32, i32) {
    %c0_i32 = arith.constant 0 : i32
    %c0_i32_0 = arith.constant 0 : i32
    return %arg0, %c0_i32 : i32, i32
  }
  func.func @transform_1(%arg0: i32) -> (i32, i32) {
    %c0_i32 = arith.constant 0 : i32
    %c0_i32_0 = arith.constant 0 : i32
    %c0_i32_1 = arith.constant 0 : i32
    return %c0_i32, %c0_i32_0 : i32, i32
  }
  func.func @transform_2(%arg0: i32) -> (i32, i32) {
    %c0_i32 = arith.constant 0 : i32
    %c0_i32_0 = arith.constant 0 : i32
    %c0_i32_1 = arith.constant 0 : i32
    return %c0_i32, %c0_i32_0 : i32, i32
  }
  func.func @transform_3(%arg0: i32) -> (i32, i32) {
    %c0_i32 = arith.constant 0 : i32
    %c0_i32_0 = arith.constant 0 : i32
    %c0_i32_1 = arith.constant 0 : i32
    return %c0_i32, %c0_i32_0 : i32, i32
  }
  func.func @transform_4(%arg0: i32) -> (i32, i32) {
    %c0_i32 = arith.constant 0 : i32
    %c0_i32_0 = arith.constant 0 : i32
    %c0_i32_1 = arith.constant 0 : i32
    return %c0_i32, %c0_i32_0 : i32, i32
  }
  func.func @transform_5(%arg0: i32) -> (i32, i32) {
    %c0_i32 = arith.constant 0 : i32
    %c0_i32_0 = arith.constant 0 : i32
    %c0_i32_1 = arith.constant 0 : i32
    return %c0_i32, %c0_i32_0 : i32, i32
  }
  func.func @transform_6(%arg0: i32) -> (i32, i32) {
    %c0_i32 = arith.constant 0 : i32
    %c0_i32_0 = arith.constant 0 : i32
    %c0_i32_1 = arith.constant 0 : i32
    return %c0_i32, %c0_i32_0 : i32, i32
  }
  func.func @transform_7(%arg0: i32) -> (i32, i32) {
    %c0_i32 = arith.constant 0 : i32
    %c0_i32_0 = arith.constant 0 : i32
    %c0_i32_1 = arith.constant 0 : i32
    return %c0_i32, %c0_i32_0 : i32, i32
  }
  func.func @transform_8(%arg0: i32) -> (i32, i32) {
    %c0_i32 = arith.constant 0 : i32
    %c0_i32_0 = arith.constant 0 : i32
    %c0_i32_1 = arith.constant 0 : i32
    return %c0_i32, %c0_i32_0 : i32, i32
  }
  func.func @transform_9(%arg0: i32) -> (i32, i32) {
    %c0_i32 = arith.constant 0 : i32
    %c0_i32_0 = arith.constant 0 : i32
    %c0_i32_1 = arith.constant 0 : i32
    return %c0_i32, %c0_i32_0 : i32, i32
  }
  func.func @transform_10(%arg0: i32) -> (i32, i32) {
    %c0_i32 = arith.constant 0 : i32
    %c0_i32_0 = arith.constant 0 : i32
    %c0_i32_1 = arith.constant 0 : i32
    return %c0_i32, %c0_i32_0 : i32, i32
  }
  func.func @transform_11(%arg0: i32) -> (i32, i32) {
    %c0_i32 = arith.constant 0 : i32
    %c0_i32_0 = arith.constant 0 : i32
    return %arg0, %c0_i32 : i32, i32
  }
}

</mosaic_0001>

<bundles_post_ra>
// kernel: tpu_custom_call.1
= control target key start
LH: loop header
LB: loop body
LE: loop exit
PB: predicated region body
PF: predicated region fallthrough
CT: control target
= control target key end

     0   :  { %s853_s0 = inlined_call_operand.hbm [shape: f32[16,32], index: 0, kind: input, shape index: {}]   ;;  %s854_s1 = inlined_call_operand.vmem [shape: f32[1,32], index: 1, kind: input, shape index: {}]   ;;  %s855_s2 = inlined_call_operand.vmem [shape: f32[32,64], index: 2, kind: input, shape index: {}]   ;;  %s856_s3 = inlined_call_operand.vmem [shape: f32[32,64], index: 3, kind: input, shape index: {}]   ;;  %s857_s4 = inlined_call_operand.vmem [shape: f32[1,64], index: 4, kind: input, shape index: {}]   ;;  %s858_s5 = inlined_call_operand.vmem [shape: f32[64,64], index: 5, kind: input, shape index: {}]   ;;  %s859_s6 = inlined_call_operand.vmem [shape: f32[1,64], index: 6, kind: input, shape index: {}]   ;;  %s860_s7 = inlined_call_operand.vmem [shape: f32[64,32], index: 7, kind: input, shape index: {}]   ;;  %s861_s8 = inlined_call_operand.vmem [shape: f32[1,32], index: 8, kind: input, shape index: {}]   ;;  %s862_s9 = inlined_call_operand.vmem [shape: f32[32,1], index: 9, kind: input, shape index: {}]   ;;  %s863_s10 = inlined_call_operand.<no memory space> [shape: f32[1,1], index: 10, kind: input, shape index: {}]   ;;  %s864_s11 = inlined_call_operand.vmem [shape: f32[16,1], index: 11, kind: output, shape index: {}]  }
   0x1   :  { %v16_v0 = vstv %s863_s10 }
   0x2   :  { %17 = vst [vmem:[#allocation2] sm:$0x1] %v16_v0 }
   0x3   :  { %18 = vsyncpa [#allocation4], 0  ;;  %s671_s19 = smov [#allocation3]  }
   0x4   :  { %s24_s20 = sshll.u32 %s671_s19, 4  ;;  %s25_s20 = int_to_ptr.vmem [resolvable:$true] %s24_s20 }
   0x5   :  { %s657_s21 = scalar_lea.vmem %s25_s20, 256  ;;  %p662_p1 = scmp.lt.s32.totalorder %s25_s20, %s25_s20 }
   0x6   :  { %p658_p0 = scmp.ne.s32.totalorder %s25_s20, %s657_s21  ;;  %p663_p2 = scmp.lt.s32.totalorder %s657_s21, %s657_s21 }
   0x8   :  { %p664_p3 = por %p663_p2, %p662_p1 }
   0xa   :  { %p665_p4 = pnand %p664_p3, %p658_p0 }
   0xc   :  { %668 = shalt.err (!%p665_p4)
}
   0xd   :  { %s672_s22 = smov 128   ;;  %s673_s23 = smov 8  }
   0xe   :  { %30 = dma.hbm_to_vmem [thread:$0]  %s853_s0, 256, %s25_s20, [#allocation4], %s672_s22, %s672_s22, %s673_s23  }
   0xf   :  { %669 = dma.done.wait [#allocation4], 256  }
  0x10   :  { %670 = vsyncadd [#allocation4], 4294967040  ;;  %v674_v1 = vmov 0.0   ;;  %vm675_vm0 = vmmov 0   ;;  %v58_v2 = vld [vmem:[%s856_s3 + $0x18] sm:$0xff]  ;;  %v57_v4 = vld [vmem:[%s856_s3 + $0x10] sm:$0xff]  ;;  %v140_v25 = vlaneseq }
  0x11   :  { %573 = vmatprep.subr.mxu0 %v674_v1  ;;  %581 = vmatprep.mubr.msk.f32.mxu0 %vm675_vm0, %v674_v1  ;;  %v139_v3 = vld [vmem:[%s855_s2 + $0x18] sm:$0xff]  ;;  %v138_v5 = vld [vmem:[%s855_s2 + $0x10] sm:$0xff]  ;;  %v56_v6 = vld [vmem:[%s856_s3 + $0x8] sm:$0xff]  ;;  %vm60_vm1 = vcmask 261120   ;;  %vm242_vm2 = vcmask 523264   ;;  %vm516_vm3 = vcmask 7168  }
  0x12   :  { %574 = vmatpush3.msra.mxu0 %v58_v2  ;;  %584 = vmatprep.subr.mxu1 %v139_v3  ;;  %v137_v7 = vld [vmem:[%s855_s2 + $0x8] sm:$0xff]  ;;  %v55_v8 = vld [vmem:[%s856_s3] sm:$0xff]  ;;  %v234_v12 = vld [vmem:[%s858_s5 + $0x38] sm:$0xff]  ;;  %v141_v26 = vshrl.u32 %v140_v25, 7 }
  0x13   :  { %575 = vmatprep.subr.mxu0 %v674_v1  ;;  %585 = vmatpush3.msra.mxu1 %v139_v3  ;;  %v136_v9 = vld [vmem:[%s855_s2] sm:$0xff]  ;;  %v135_v13 = vld [vmem:[#allocation3 + $0x8] sm:$0xff]  ;;  %v230_v17 = vld [vmem:[%s858_s5 + $0x18] sm:$0xff] }
  0x14   :  { %576 = vmatpush3.msra.mxu0 %v57_v4  ;;  %586 = vmatprep.subr.mxu1 %v138_v5  ;;  %v54_v10 = vld [vmem:[%s854_s1] sm:$0x1]  ;;  %v134_v11 = vld [vmem:[#allocation3] sm:$0xff]  ;;  %v233_v14 = vld [vmem:[%s858_s5 + $0x30] sm:$0xff]  ;;  %v142_v28 = vsub.s32 0, %v141_v26 }
  0x15   :  { %577 = vmatprep.subr.mxu0 %v674_v1  ;;  %587 = vmatpush3.msra.mxu1 %v138_v5  ;;  %v232_v15 = vld [vmem:[%s858_s5 + $0x28] sm:$0xff]  ;;  %v231_v16 = vld [vmem:[%s858_s5 + $0x20] sm:$0xff]  ;;  %v229_v18 = vld [vmem:[%s858_s5 + $0x10] sm:$0xff] }
  0x16   :  { %578 = vmatpush3.msra.mxu0 %v56_v6  ;;  %588 = vmatprep.subr.mxu1 %v137_v7  ;;  %v228_v19 = vld [vmem:[%s858_s5 + $0x8] sm:$0xff]  ;;  %v227_v20 = vld [vmem:[%s858_s5] sm:$0xff]  ;;  %v333_v21 = vld [vmem:[%s860_s7 + $0x38] sm:$0xff] }
  0x17   :  { %579 = vmatprep.subr.mxu0 %v674_v1  ;;  %589 = vmatpush3.msra.mxu1 %v137_v7  ;;  %v332_v22 = vld [vmem:[%s860_s7 + $0x30] sm:$0xff]  ;;  %v331_v23 = vld [vmem:[%s860_s7 + $0x28] sm:$0xff]  ;;  %v330_v24 = vld [vmem:[%s860_s7 + $0x20] sm:$0xff] }
  0x18   :  { %580 = vmatpush3.msra.mxu0 %v55_v8  ;;  %590 = vmatprep.subr.mxu1 %v136_v9  ;;  %v59_v27 = vld [vmem:[%s857_s4] sm:$0x1]  ;;  %v329_v39 = vld [vmem:[%s860_s7 + $0x18] sm:$0xff]  ;;  %v328_v40 = vld [vmem:[%s860_s7 + $0x10] sm:$0xff] }
  0x19   :  { %582 = vmatmul.mubr.msk.f32.vlgmr.msra.gmra.mxu0 %vm60_vm1, %v54_v10  ;;  %591 = vmatpush3.msra.mxu1 %v136_v9  ;;  %v327_v41 = vld [vmem:[%s860_s7 + $0x8] sm:$0xff]  ;;  %v326_v42 = vld [vmem:[%s860_s7] sm:$0xff]  ;;  %v427_v50 = vld [vmem:[%s862_s9 + $0x18] sm:$0xff] }
  0x1a   :  { %592 = vmatprep.mubr.msk.f32.mxu1 %vm60_vm1, %v134_v11  ;;  %595 = vmatprep.subr.mxu0 %v234_v12  ;;  %v527_v43 = vld [vmem:[%s859_s6] ss:$0 sm:$0xff]  ;;  %v426_v51 = vld [vmem:[%s862_s9 + $0x10] sm:$0xff]  ;;  %v425_v52 = vld [vmem:[%s862_s9 + $0x8] sm:$0xff] }
  0x1b   :  { %593 = vmatmul.mubr.msk.f32.vlgmr.msra.gmra.mxu1 %vm60_vm1, %v135_v13  ;;  %596 = vmatpush3.msra.mxu0 %v234_v12  ;;  %v424_v53 = vld [vmem:[%s862_s9] sm:$0xff] }
  0x1c   :  { %597 = vmatprep.subr.mxu0 %v233_v14  ;;  %614 = vmatprep.subr.mxu1 %v333_v21  ;;  %v530_v54 = vld [vmem:[%s861_s8] ss:$0 sm:$0xff] }
  0x1d   :  { %598 = vmatpush3.msra.mxu0 %v233_v14  ;;  %615 = vmatpush3.msra.mxu1 %v333_v21  ;;  %v533_v61 = vld [vmem:[#allocation2] ss:$0 sm:$0xff] }
  0x1e   :  { %599 = vmatprep.subr.mxu0 %v232_v15  ;;  %616 = vmatprep.subr.mxu1 %v332_v22 }
  0x1f   :  { %600 = vmatpush3.msra.mxu0 %v232_v15  ;;  %617 = vmatpush3.msra.mxu1 %v332_v22 }
  0x20   :  { %601 = vmatprep.subr.mxu0 %v231_v16  ;;  %618 = vmatprep.subr.mxu1 %v331_v23 }
  0x21   :  { %602 = vmatpush3.msra.mxu0 %v231_v16  ;;  %619 = vmatpush3.msra.mxu1 %v331_v23 }
  0x22   :  { %603 = vmatprep.subr.mxu0 %v230_v17  ;;  %620 = vmatprep.subr.mxu1 %v330_v24 }
  0x23   :  { %604 = vmatpush3.msra.mxu0 %v230_v17  ;;  %621 = vmatpush3.msra.mxu1 %v330_v24 }
  0x24   :  { %605 = vmatprep.subr.mxu0 %v229_v18  ;;  %622 = vmatprep.subr.mxu1 %v329_v39 }
  0x25   :  { %606 = vmatpush3.msra.mxu0 %v229_v18  ;;  %623 = vmatpush3.msra.mxu1 %v329_v39 }
  0x26   :  { %607 = vmatprep.subr.mxu0 %v228_v19  ;;  %624 = vmatprep.subr.mxu1 %v328_v40 }
  0x27   :  { %608 = vmatpush3.msra.mxu0 %v228_v19  ;;  %625 = vmatpush3.msra.mxu1 %v328_v40 }
  0x28   :  { %609 = vmatprep.subr.mxu0 %v227_v20  ;;  %626 = vmatprep.subr.mxu1 %v327_v41 }
  0x29   :  { %610 = vmatpush3.msra.mxu0 %v227_v20  ;;  %627 = vmatpush3.msra.mxu1 %v327_v41 }
  0x2a   :  { %628 = vmatprep.subr.mxu1 %v326_v42  ;;  %633 = vmatprep.subr.mxu0 %v427_v50 }
  0x2b   :  { %629 = vmatpush3.msra.mxu1 %v326_v42 }
  0xd9   :  { %v130_v29 = vpop.f32.mrf.mxu0 }
  0xda   :  { %v131_v30 = vadd.f32 %v130_v29, %v59_v27 }
  0xdb   :  { %v594_v31 = vpop.f32.mrf.mxu1  ;;  %v583_v32 = vpop.f32.mrf.mxu0 }
  0xdc   :  { %v143_v33 = vrot.slane %v131_v30, %v142_v28 }
  0xdd   :  { %v216_v34 = vpop.f32.mrf.mxu1 }
  0xde   :  { %v222_v35 = vadd.f32 %v594_v31, %v143_v33  ;;  %v217_v36 = vadd.f32 %v216_v34, %v143_v33 }
  0xe0   :  { %v226_v37 = vmax.f32 %v222_v35, 0.0  ;;  %v225_v38 = vmax.f32 %v217_v36, 0.0 }
  0xe2   :  { %611 = vmatprep.mubr.msk.f32.mxu0 %vm242_vm2, %v225_v38 }
  0xe3   :  { %612 = vmatmul.mubr.msk.f32.vlgmr.msra.gmra.mxu0 %vm242_vm2, %v226_v37 }
  0xe4   :  { %634 = vmatpush3.msra.mxu0 %v427_v50 }
  0xe5   :  { %635 = vmatprep.subr.mxu0 %v426_v51 }
  0xe6   :  { %636 = vmatpush3.msra.mxu0 %v426_v51 }
  0xe7   :  { %637 = vmatprep.subr.mxu0 %v425_v52 }
  0xe8   :  { %638 = vmatpush3.msra.mxu0 %v425_v52 }
  0xe9   :  { %639 = vmatprep.subr.mxu0 %v424_v53 }
  0xea   :  { %640 = vmatpush3.msra.mxu0 %v424_v53 }
 0x1a3   :  { %v613_v44 = vpop.f32.mrf.mxu0 }
 0x1a4   :  { %v321_v45 = vadd.f32 %v613_v44, %v527_v43 }
 0x1a5   :  { %v315_v46 = vpop.f32.mrf.mxu0 }
 0x1a6   :  { %v316_v47 = vadd.f32 %v527_v43, %v315_v46  ;;  %v325_v49 = vmax.f32 %v321_v45, 0.0 }
 0x1a8   :  { %v324_v48 = vmax.f32 %v316_v47, 0.0 }
 0x1aa   :  { %630 = vmatprep.mubr.msk.f32.mxu1 %vm242_vm2, %v324_v48 }
 0x1ab   :  { %631 = vmatmul.mubr.msk.f32.vlgmr.msra.gmra.mxu1 %vm242_vm2, %v325_v49 }
 0x26b   :  { %v632_v55 = vpop.f32.mrf.mxu1 }
 0x26c   :  { %v419_v56 = vadd.f32 %v632_v55, %v530_v54 }
 0x26d   :  { %v413_v57 = vpop.f32.mrf.mxu1 }
 0x26e   :  { %v414_v58 = vadd.f32 %v530_v54, %v413_v57  ;;  %v423_v60 = vmax.f32 %v419_v56, 0.0 }
 0x270   :  { %v422_v59 = vmax.f32 %v414_v58, 0.0 }
 0x272   :  { %641 = vmatprep.mubr.msk.f32.mxu0 %vm60_vm1, %v422_v59 }
 0x273   :  { %642 = vmatmul.mubr.msk.f32.vlgmr.msra.gmra.mxu0 %vm60_vm1, %v423_v60 }
 0x333   :  { %v643_v62 = vpop.f32.mrf.mxu0 }
 0x334   :  { %v513_v63 = vadd.f32 %v643_v62, %v533_v61 }
 0x335   :  { %v507_v0 = vpop.f32.mrf.mxu0 }
 0x336   :  { %518 = vst.msk [vmem:[%s864_s11 + $0x8] sm:$0xff] %vm516_vm3, %v513_v63  ;;  %v508_v1 = vadd.f32 %v533_v61, %v507_v0 }
 0x338   :  { %517 = vst.msk [vmem:[%s864_s11] sm:$0xff] %vm516_vm3, %v508_v1 }
 0x339   :  { %523 = vsyncpa [#allocation4], 1 }

</bundles_post_ra>
